<compile_context>
chip_gen: v7x
topology: tpu7x:2x2x1
jax: 0.10.0
libtpu: 0.0.40
codegen_flags: <defaults>
</compile_context>

<pallas_src>
import functools
import math

import jax
import jax.numpy as jnp
from jax.experimental import pallas as pl
from jax.experimental.pallas import tpu as pltpu


def make_positional_encodings(max_seq_len, d_model, dtype=jnp.float32):
    """Sin/cos table, identical math to the PyTorch register_buffer."""
    assert d_model % 2 == 0, "d_model must be even (as in the PyTorch module)"
    position = jnp.arange(max_seq_len, dtype=jnp.float32)[:, None]        # [S, 1]
    evens = jnp.arange(0, d_model, 2, dtype=jnp.float32)                  # [D/2]
    denominator = jnp.power(10000.0, evens / d_model)                     # [D/2]
    angles = position / denominator                                       # [S, D/2]
    pe = jnp.zeros((max_seq_len, d_model), dtype=jnp.float32)
    pe = pe.at[:, 0::2].set(jnp.sin(angles))
    pe = pe.at[:, 1::2].set(jnp.cos(angles))
    return pe.astype(dtype)


def _posenc_kernel(seed_ref, x_ref, pe_ref, o_ref, *,
                   keep_threshold, keep_scale, apply_dropout):
    # x_ref: (Bb, bs*D)   pe_ref: (1, bs*D)  -> broadcast add over batch rows.
    y = x_ref[...] + pe_ref[...]

    if apply_dropout:
        bb, cols = y.shape
        # Unique per-element counter across the whole grid.
        row = jax.lax.broadcasted_iota(jnp.int32, (bb, cols), 0)
        col = jax.lax.broadcasted_iota(jnp.int32, (bb, cols), 1)
        g_row = pl.program_id(1) * bb + row
        g_col = pl.program_id(0) * cols + col
        gid = g_row * (pl.num_programs(0) * cols) + g_col
        # lowbias32 mixer: portable (plain jnp ops), runs on VPU / interpret.
        h = gid.astype(jnp.uint32)
        h = h ^ (seed_ref[0].astype(jnp.uint32) * jnp.uint32(0x9E3779B9))
        h = h ^ (h >> jnp.uint32(16))
        h = h * jnp.uint32(0x7FEB352D)
        h = h ^ (h >> jnp.uint32(15))
        h = h * jnp.uint32(0x846CA68B)
        h = h ^ (h >> jnp.uint32(16))
        # Top 24 bits as a uniform in [0, 2^24): drop with probability p.
        keep = (h >> jnp.uint32(8)) >= jnp.uint32(keep_threshold)
        y = jnp.where(keep, y * keep_scale, jnp.zeros_like(y))

    o_ref[...] = y.astype(o_ref.dtype)


def _choose_blocks(B, S, D, itemsize, budget_bytes=16 * 1024 * 1024):
    """Pick (batch_rows_per_block, seq_positions_per_block) for the flattened
    [B, S*D] layout.  Seq block is a multiple of `step` so bs*D is 128-lane
    aligned and bs is sublane(8)-aligned; batch block is B or a multiple of 8."""
    g = math.gcd(D, 128)
    lane = 128 // g
    step = 8 * lane // math.gcd(8, lane)          # lcm(8, 128 // gcd(D, 128))
    s_cover = -(-S // step) * step                # round_up(S, step)

    def max_bs(bb):
        # Double-buffered live set: x-in block + out block + pe block.
        per_pos = 2 * (2 * bb + 1) * D * itemsize
        return min((budget_bytes // per_pos) // step * step, s_cover)

    candidates = [B] + list(range((B // 8) * 8, 0, -8))
    for bb in candidates:
        bs = max_bs(bb)
        if bs >= step:
            return bb, bs
    return (B if B < 8 else 8), step


@functools.partial(jax.jit, static_argnames=("p_dropout", "deterministic"))
def positional_encoding(x, pe_table, seed, *, p_dropout=0.1, deterministic=True):
    """x: [B, S, D]; pe_table: [max_seq, D] (precomputed buffer); seed: int32[1]."""
    B, S, D = x.shape
    max_seq, D_pe = pe_table.shape
    assert D_pe == D, "pe_table d_model mismatch"
    assert S <= max_seq, "sequence longer than max_seq_len"

    if pe_table.dtype != x.dtype:
        # Callers should pre-store the buffer in x.dtype to avoid this cast.
        pe_table = pe_table.astype(x.dtype)

    itemsize = jnp.dtype(x.dtype).itemsize
    Bb, bs = _choose_blocks(B, S, D, itemsize)
    bsd = bs * D
    grid = (pl.cdiv(S, bs), pl.cdiv(B, Bb))       # batch innermost -> PE reuse

    # Flatten (seq, d_model) into one lane-dense axis; pure metadata reshape.
    x2 = x.reshape(B, S * D)
    pe2 = pe_table.reshape(1, max_seq * D)        # full buffer, no HBM copy

    apply_dropout = (not deterministic) and (float(p_dropout) > 0.0)
    kernel = functools.partial(
        _posenc_kernel,
        keep_threshold=int(round(float(p_dropout) * float(1 << 24))),
        keep_scale=(1.0 / (1.0 - float(p_dropout))) if apply_dropout else 1.0,
        apply_dropout=apply_dropout,
    )

    cost = pl.CostEstimate(
        flops=2 * B * S * D,
        transcendentals=0,
        bytes_accessed=2 * B * S * D * itemsize + S * D * itemsize,
    )

    out2 = pl.pallas_call(
        kernel,
        out_shape=jax.ShapeDtypeStruct((B, S * D), x.dtype),
        grid_spec=pltpu.PrefetchScalarGridSpec(
            num_scalar_prefetch=1,  # seed lives in SMEM
            grid=grid,
            in_specs=[
                # x tile: Bb batch rows, bs seq positions (lane-dense bs*D cols)
                pl.BlockSpec((Bb, bsd), lambda s, b, seed_ref: (b, s)),
                # PE tile: shared across batch (index map ignores b)
                pl.BlockSpec((1, bsd), lambda s, b, seed_ref: (0, s)),
            ],
            out_specs=pl.BlockSpec((Bb, bsd), lambda s, b, seed_ref: (b, s)),
        ),
        compiler_params=pltpu.CompilerParams(
            dimension_semantics=("parallel", "parallel"),
            vmem_limit_bytes=48 * 1024 * 1024,
        ),
        cost_estimate=cost,
    )(seed, x2, pe2)
    return out2.reshape(B, S, D)


if __name__ == "__main__":
    # Small deterministic config consistent with the module:
    # batch=2, seq=8, d_model=32, max_seq_len=16, p_dropout=0.1
    batch, seq, d_model, max_seq_len = 2, 8, 32, 16
    p_dropout = 0.1

    key = jax.random.PRNGKey(0)
    x = jax.random.normal(key, (batch, seq, d_model), dtype=jnp.float32)

    pe_table = make_positional_encodings(max_seq_len, d_model, dtype=x.dtype)
    seed = jnp.zeros((1,), dtype=jnp.int32)

    # Eval mode (dropout disabled): exact comparison against plain JAX reference.
    y_eval = positional_encoding(
        x, pe_table, seed, p_dropout=p_dropout, deterministic=True
    )
    jax.block_until_ready(y_eval)
    y_ref = x + pe_table[:seq][None, :, :]
    assert y_eval.shape == (batch, seq, d_model)
    assert jnp.allclose(y_eval, y_ref, atol=1e-6, rtol=1e-6)

    # Train mode (dropout active): kept elements equal eval values scaled by
    # 1/(1-p); dropped elements are zero.
    y_train = positional_encoding(
        x, pe_table, seed, p_dropout=p_dropout, deterministic=False
    )
    jax.block_until_ready(y_train)
    assert y_train.shape == (batch, seq, d_model)
    keep_mask = y_train != 0.0
    scaled = y_ref * (1.0 / (1.0 - p_dropout))
    assert jnp.allclose(
        jnp.where(keep_mask, y_train, 0.0),
        jnp.where(keep_mask, scaled, 0.0),
        atol=1e-5,
        rtol=1e-5,
    )
    drop_frac = 1.0 - float(jnp.mean(keep_mask.astype(jnp.float32)))
    assert 0.0 <= drop_frac < 0.5  # loose sanity bound for p = 0.1

    print("KERNEL_OK")
</pallas_src>

<mosaic_0001>
module attributes {stable_mosaic.version = 11 : i64} {
  func.func @_posenc_kernel(%arg0: i32, %arg1: i32, %arg2: memref<1xi32, #tpu.memory_space<smem>>, %arg3: memref<2x256xf32, #tpu.memory_space<vmem>>, %arg4: memref<1x256xf32, #tpu.memory_space<vmem>>, %arg5: memref<2x256xf32, #tpu.memory_space<vmem>>) attributes {dimension_semantics = [#tpu.dimension_semantics<parallel>, #tpu.dimension_semantics<parallel>], iteration_bounds = array<i64: 1, 1>, scalar_prefetch = 1 : i64, scratch_operands = 0 : i64, tpu.core_type = #tpu.core_type<tc>, window_params = [{transform_indices = @transform_0, window_bounds = array<i64: 2, 256>}, {transform_indices = @transform_1, window_bounds = array<i64: 1, 256>}, {transform_indices = @transform_2, window_bounds = array<i64: 2, 256>}]} {
    %c0 = arith.constant 0 : index
    %c0_0 = arith.constant 0 : index
    %0 = vector.load %arg3[%c0, %c0_0] : memref<2x256xf32, #tpu.memory_space<vmem>>, vector<2x256xf32>
    %c0_1 = arith.constant 0 : index
    %c0_2 = arith.constant 0 : index
    %1 = vector.load %arg4[%c0_1, %c0_2] : memref<1x256xf32, #tpu.memory_space<vmem>>, vector<1x256xf32>
    %2 = vector.broadcast %1 : vector<1x256xf32> to vector<2x256xf32>
    %3 = arith.addf %0, %2 : vector<2x256xf32>
    %c0_3 = arith.constant 0 : index
    %c0_4 = arith.constant 0 : index
    %4 = vector.load %arg5[%c0_3, %c0_4] : memref<2x256xf32, #tpu.memory_space<vmem>>, vector<2x256xf32>
    tpu.vector_store %arg5[%c0_3, %c0_4], %3 {strides = array<i32>} : memref<2x256xf32, #tpu.memory_space<vmem>>, vector<2x256xf32>,
    return
  }
  func.func @transform_0(%arg0: i32, %arg1: i32, %arg2: memref<1xi32, #tpu.memory_space<smem>>) -> (i32, i32) {
    %c0_i32 = arith.constant 0 : i32
    return %arg1, %arg0 : i32, i32
  }
  func.func @transform_1(%arg0: i32, %arg1: i32, %arg2: memref<1xi32, #tpu.memory_space<smem>>) -> (i32, i32) {
    %c0_i32 = arith.constant 0 : i32
    %c0_i32_0 = arith.constant 0 : i32
    return %c0_i32, %arg0 : i32, i32
  }
  func.func @transform_2(%arg0: i32, %arg1: i32, %arg2: memref<1xi32, #tpu.memory_space<smem>>) -> (i32, i32) {
    %c0_i32 = arith.constant 0 : i32
    return %arg1, %arg0 : i32, i32
  }
}

</mosaic_0001>

<bundles_post_ra>
// kernel: positional_encoding.1
= control target key start
LH: loop header
LB: loop body
LE: loop exit
PB: predicated region body
PF: predicated region fallthrough
CT: control target
= control target key end

     0   :  { %v16_v0 = vlaneseq  ;;  %v40_v1 = vmov 1983009808   ;;  %s70_s0 = inlined_call_operand.<no memory space> [shape: s32[1], index: 0, kind: input, shape index: {}]   ;;  %s71_s2 = inlined_call_operand.vmem [shape: f32[1,512], index: 2, kind: input, shape index: {}]   ;;  %s72_s1 = inlined_call_operand.vmem [shape: f32[2,256], index: 1, kind: input, shape index: {}]   ;;  %s73_s3 = inlined_call_operand.vmem [shape: f32[2,256], index: 3, kind: output, shape index: {}]  }
   0x1   :  { %v26_v2 = vunpack.c.l.s4 %v40_v1  ;;  %v14_v4 = vld [vmem:[%s71_s2] sm:$0x3] }
   0x2   :  { %v17_v3 = vshrl.u32 %v16_v0, 7  ;;  %v13_v12 = vld [vmem:[%s72_s1] sm:$0xf] }
   0x3   :  { %v27_v5 = vunpack.c.0.s8 %v26_v2 }
   0x4   :  { %v18_v6 = vsub.s32 0, %v17_v3  ;;  %v22_v7 = vsub.s32 1, %v17_v3 }
   0x5   :  { %v30_v10 = vsub.s32 %v27_v5, %v17_v3 }
   0x6   :  { %v19_v8 = vrot.slane %v14_v4, %v18_v6  ;;  %v23_v9 = vrot.slane %v14_v4, %v22_v7 }
   0x8   :  { %v24_v11 = vcombine.low %v19_v8, %v23_v9 }
   0xa   :  { %v31_v13 = vrot.slane %v24_v11, %v30_v10 }
   0xc   :  { %v33_v14 = vadd.f32 %v31_v13, %v13_v12 }
   0xe   :  { %34 = vst [vmem:[%s73_s3] sm:$0xf] %v33_v14 }

</bundles_post_ra>
